<compile_context>
chip_gen: v5e
topology: v5e:2x2
jax: 0.10.0
libtpu: 0.0.40
codegen_flags: <defaults>
</compile_context>

<pallas_src>
import jax
import jax.numpy as jnp
from jax import lax
from jax.experimental import pallas as pl
from jax.experimental.pallas import tpu as pltpu

LANE = 128
SUBLANE = 8


def _round_up(x, m):
    return ((x + m - 1) // m) * m


def _cdiv(a, b):
    return (a + b - 1) // b


# ----------------------------------------------------------------------------
# Kernel: grid = (batch_tiles, hidden_tiles); hidden axis is the reduction.
# ----------------------------------------------------------------------------
def meta_sequential_kernel(x_ref, w1_ref, b1_ref, w2_ref, b2_ref, out_ref, acc_ref):
    j = pl.program_id(1)

    @pl.when(j == 0)
    def _init():
        acc_ref[...] = jnp.zeros_like(acc_ref)

    # Layer 1 (one chunk of hidden units): h = relu(x @ W1_chunk + b1_chunk).
    # Weights are pre-transposed, so this is the canonical MXU feed (no XLU).
    h = lax.dot_general(
        x_ref[...], w1_ref[...],
        dimension_numbers=(((1,), (0,)), ((), ())),
        preferred_element_type=jnp.float32,
    )
    h = jnp.maximum(h + b1_ref[...].astype(jnp.float32), 0.0)

    # Layer 2 partial product, accumulated over hidden chunks in f32.
    acc_ref[...] += lax.dot_general(
        h.astype(w2_ref.dtype), w2_ref[...],
        dimension_numbers=(((1,), (0,)), ((), ())),
        preferred_element_type=jnp.float32,
    )

    @pl.when(j == pl.num_programs(1) - 1)
    def _finalize():
        out_ref[...] = (acc_ref[...] + b2_ref[...].astype(jnp.float32)).astype(out_ref.dtype)


# ----------------------------------------------------------------------------
# One-time parameter preparation (pad to lane multiples + transpose).
# ----------------------------------------------------------------------------
def prepare_meta_sequential_params(w1, b1, w2, b2, compute_dtype=None):
    """Pad + transpose weights once (per model setup, not per forward call)."""
    hidden1, inp = w1.shape
    output = w2.shape[0]
    if compute_dtype is not None:
        # Optional bf16 compute path for v6e/v7x MXUs (accuracy budget permitting).
        w1, b1, w2, b2 = (a.astype(compute_dtype) for a in (w1, b1, w2, b2))

    inp_p = _round_up(inp, LANE)
    hid_p = _round_up(hidden1, LANE)
    out_p = _round_up(output, LANE)

    # (in, hid) / (hid, out) layouts -> (1,)x(0,) contraction in the kernel.
    w1_t = jnp.zeros((inp_p, hid_p), w1.dtype).at[:inp, :hidden1].set(w1.T)
    b1_p = jnp.zeros((1, hid_p), b1.dtype).at[0, :hidden1].set(b1)
    w2_t = jnp.zeros((hid_p, out_p), w2.dtype).at[:hidden1, :output].set(w2.T)
    b2_p = jnp.zeros((1, out_p), b2.dtype).at[0, :output].set(b2)

    return dict(
        w1_t=w1_t, b1=b1_p, w2_t=w2_t, b2=b2_p,
        dims=(inp, hidden1, output), padded=(inp_p, hid_p, out_p),
    )


# ----------------------------------------------------------------------------
# Per-chip tile / VMEM sizing.
# ----------------------------------------------------------------------------
def _vmem_capacity_bytes():
    try:
        return int(pltpu.get_tpu_info().vmem_capacity_bytes)
    except Exception:
        return 64 * 1024 * 1024  # conservative fallback (v7x per-TC VMEM)


def _select_tiles(Bp, inp_p, hid_p, out_p, x_item, w_item, vmem_budget, tb_cap):
    tb = min(tb_cap, Bp)
    if Bp > 64:
        # At least 2 batch steps so "parallel" can shard across v7x's 2 TCs.
        tb = min(tb, _round_up(_cdiv(Bp, 2), SUBLANE))

    th_candidates = [hid_p] + [c for c in (4096, 2048, 1024, 512, 256, 128)
                               if c < hid_p and hid_p % c == 0]
    ti = 0
    th = th_candidates[ti]

    def footprint(tb, th):
        nh = hid_p // th
        wbuf = 1 if nh == 1 else 2            # weight blocks double-buffered iff re-fetched
        f = 2 * tb * inp_p * x_item           # x tiles (double-buffered)
        f += 2 * tb * out_p * x_item          # out tiles (double-buffered)
        f += wbuf * inp_p * th * w_item       # W1 chunk
        f += wbuf * SUBLANE * th * w_item     # b1 chunk (sublane padded)
        f += wbuf * th * out_p * w_item       # W2 chunk
        f += SUBLANE * out_p * w_item         # b2
        f += tb * out_p * 4                   # f32 accumulator scratch
        f += tb * th * 4                      # f32 hidden intermediate
        return f

    while footprint(tb, th) > vmem_budget:
        if ti + 1 < len(th_candidates) and (th > tb or tb <= 128):
            ti += 1
            th = th_candidates[ti]
        elif tb > SUBLANE:
            tb = max(SUBLANE, _round_up(tb // 2, SUBLANE))
        elif ti + 1 < len(th_candidates):
            ti += 1
            th = th_candidates[ti]
        else:
            break
    return tb, th


# ----------------------------------------------------------------------------
# Forward pass.
# ----------------------------------------------------------------------------
def meta_sequential_apply(x, params):
    inp, hidden1, output = params["dims"]
    inp_p, hid_p, out_p = params["padded"]
    w1_t, b1_p, w2_t, b2_p = params["w1_t"], params["b1"], params["w2_t"], params["b2"]

    B = x.shape[0]
    out_dtype = x.dtype

    # Fast path: skip the activation padding copy when already (8, 128)-aligned.
    if B % SUBLANE == 0 and inp == inp_p:
        x_p, Bp = x, B
    else:
        Bp = _round_up(B, SUBLANE)
        x_p = jnp.zeros((Bp, inp_p), x.dtype).at[:B, :inp].set(x)

    x_item = jnp.dtype(x.dtype).itemsize
    w_item = jnp.dtype(w1_t.dtype).itemsize

    vmem_cap = _vmem_capacity_bytes()
    vmem_budget = int(vmem_cap * 0.75)                      # ~25% headroom
    tb_cap = 1024 if vmem_cap >= (96 << 20) else 512        # bigger tiles on v5e/v6e
    TB, TH = _select_tiles(Bp, inp_p, hid_p, out_p, x_item, w_item, vmem_budget, tb_cap)

    nb = _cdiv(Bp, TB)    # ragged last batch block; garbage rows are sliced off
    nh = hid_p // TH
    grid = (nb, nh)

    # Honest advisory cost estimate (unpadded work, per-operand dtypes).
    flops = 2 * B * (inp * hidden1 + hidden1 * output)
    bytes_accessed = (
        B * inp * x_item
        + hidden1 * inp * w_item + hidden1 * jnp.dtype(b1_p.dtype).itemsize
        + output * hidden1 * w_item + output * jnp.dtype(b2_p.dtype).itemsize
        + B * output * jnp.dtype(out_dtype).itemsize
    )

    vmem_space = pltpu.MemorySpace.VMEM

    def _spec(shape, index_map, mode=None):
        if mode is None:
            return pl.BlockSpec(shape, index_map, memory_space=vmem_space)
        return pl.BlockSpec(shape, index_map, memory_space=vmem_space, pipeline_mode=mode)

    def build_call(single_buffer):
        # Blocks with a grid-constant index_map are never re-fetched -> they can
        # be single-buffered to halve resident-weight VMEM (matters on v7x).
        const_mode = pl.Buffered(1) if single_buffer else None
        w_mode = const_mode if nh == 1 else None
        return pl.pallas_call(
            meta_sequential_kernel,
            out_shape=jax.ShapeDtypeStruct((Bp, out_p), out_dtype),
            grid_spec=pltpu.PrefetchScalarGridSpec(
                num_scalar_prefetch=0,
                grid=grid,
                in_specs=[
                    _spec((TB, inp_p), lambda i, j: (i, 0)),
                    _spec((inp_p, TH), lambda i, j: (0, j), w_mode),
                    _spec((1, TH), lambda i, j: (0, j), w_mode),
                    _spec((TH, out_p), lambda i, j: (j, 0), w_mode),
                    _spec((1, out_p), lambda i, j: (0, 0), const_mode),
                ],
                out_specs=_spec((TB, out_p), lambda i, j: (i, 0)),
                scratch_shapes=[pltpu.VMEM((TB, out_p), jnp.float32)],
            ),
            compiler_params=pltpu.CompilerParams(
                # Batch tiles independent (megacore-shardable); hidden is the reduction.
                dimension_semantics=("parallel", "arbitrary"),
                vmem_limit_bytes=int(max(vmem_budget, 16 * 1024 * 1024)),
            ),
            cost_estimate=pl.CostEstimate(
                flops=flops, transcendentals=0, bytes_accessed=bytes_accessed,
            ),
        )

    try:
        out_pad = build_call(True)(x_p, w1_t, b1_p, w2_t, b2_p)
    except Exception:
        # Fallback if this JAX build rejects pipeline_mode=pl.Buffered(1).
        out_pad = build_call(False)(x_p, w1_t, b1_p, w2_t, b2_p)

    # Slice away batch / lane padding.
    return out_pad[:B, :output]


def meta_sequential_forward(x, w1, b1, w2, b2, compute_dtype=None):
    """Fused forward of Meta_Sequential: relu(x @ W1^T + b1) @ W2^T + b2."""
    params = prepare_meta_sequential_params(w1, b1, w2, b2, compute_dtype)
    if compute_dtype is not None:
        x = x.astype(compute_dtype)
    return meta_sequential_apply(x, params)


def reference_forward(x, w1, b1, w2, b2):
    h = jnp.maximum(x @ w1.T + b1, 0.0)
    return h @ w2.T + b2


# TODO(synk): MetaModule.update_params / set_param / copy are host-side parameter
# bookkeeping for meta-learning, not part of the forward pass; not a kernel concern.

if __name__ == "__main__":
    # Small shapes consistent with Meta_Sequential(input, hidden1, output).
    B, INPUT, HIDDEN1, OUTPUT = 8, 32, 64, 16

    key = jax.random.PRNGKey(0)
    k_x, k_w1, k_b1, k_w2, k_b2 = jax.random.split(key, 5)

    x = jax.random.normal(k_x, (B, INPUT), dtype=jnp.float32)

    # nn.Linear-style uniform(-1/sqrt(fan_in), 1/sqrt(fan_in)) init.
    bound1 = 1.0 / (INPUT ** 0.5)
    w1 = jax.random.uniform(k_w1, (HIDDEN1, INPUT), jnp.float32, -bound1, bound1)
    b1 = jax.random.uniform(k_b1, (HIDDEN1,), jnp.float32, -bound1, bound1)

    bound2 = 1.0 / (HIDDEN1 ** 0.5)
    w2 = jax.random.uniform(k_w2, (OUTPUT, HIDDEN1), jnp.float32, -bound2, bound2)
    b2 = jax.random.uniform(k_b2, (OUTPUT,), jnp.float32, -bound2, bound2)

    out = meta_sequential_forward(x, w1, b1, w2, b2)
    out = jax.block_until_ready(out)

    ref = reference_forward(x, w1, b1, w2, b2)
    assert out.shape == (B, OUTPUT)
    assert jnp.allclose(out, ref, atol=1e-5, rtol=1e-5)

    print("KERNEL_OK")
</pallas_src>

<mosaic_0001>
module attributes {stable_mosaic.version = 11 : i64} {
  func.func @meta_sequential_kernel(%arg0: i32, %arg1: i32, %arg2: memref<8x128xf32, #tpu.memory_space<vmem>>, %arg3: memref<128x128xf32, #tpu.memory_space<vmem>>, %arg4: memref<1x128xf32, #tpu.memory_space<vmem>>, %arg5: memref<128x128xf32, #tpu.memory_space<vmem>>, %arg6: memref<1x128xf32, #tpu.memory_space<vmem>>, %arg7: memref<8x128xf32, #tpu.memory_space<vmem>>, %arg8: memref<8x128xf32, #tpu.memory_space<vmem>>) attributes {dimension_semantics = [#tpu.dimension_semantics<parallel>, #tpu.dimension_semantics<arbitrary>], iteration_bounds = array<i64: 1, 1>, scalar_prefetch = 0 : i64, scratch_operands = 1 : i64, tpu.core_type = #tpu.core_type<tc>, window_params = [{transform_indices = @transform_0, window_bounds = array<i64: 8, 128>}, {pipeline_mode = #tpu.pipeline_mode<synchronous>, transform_indices = @transform_1, window_bounds = array<i64: 128, 128>}, {pipeline_mode = #tpu.pipeline_mode<synchronous>, transform_indices = @transform_2, window_bounds = array<i64: 1, 128>}, {pipeline_mode = #tpu.pipeline_mode<synchronous>, transform_indices = @transform_3, window_bounds = array<i64: 128, 128>}, {pipeline_mode = #tpu.pipeline_mode<synchronous>, transform_indices = @transform_4, window_bounds = array<i64: 1, 128>}, {transform_indices = @transform_5, window_bounds = array<i64: 8, 128>}]} {
    %c0_i32 = arith.constant 0 : i32
    %0 = arith.cmpi eq, %arg1, %c0_i32 : i32
    %1 = arith.extui %0 : i1 to i32
    %c0_i32_0 = arith.constant 0 : i32
    %2 = arith.cmpi ne, %1, %c0_i32_0 : i32
    scf.if %2 {
      %cst_16 = arith.constant 0.000000e+00 : f32
      %19 = vector.broadcast %cst_16 : f32 to vector<8x128xf32>
      %c0_17 = arith.constant 0 : index
      %c0_18 = arith.constant 0 : index
      %20 = vector.load %arg8[%c0_17, %c0_18] : memref<8x128xf32, #tpu.memory_space<vmem>>, vector<8x128xf32>
      tpu.vector_store %arg8[%c0_17, %c0_18], %19 {strides = array<i32>} : memref<8x128xf32, #tpu.memory_space<vmem>>, vector<8x128xf32>,
    } else {
    }
    %c0 = arith.constant 0 : index
    %c0_1 = arith.constant 0 : index
    %3 = vector.load %arg2[%c0, %c0_1] : memref<8x128xf32, #tpu.memory_space<vmem>>, vector<8x128xf32>
    %c0_2 = arith.constant 0 : index
    %c0_3 = arith.constant 0 : index
    %4 = vector.load %arg3[%c0_2, %c0_3] : memref<128x128xf32, #tpu.memory_space<vmem>>, vector<128x128xf32>
    %cst = arith.constant dense<0.000000e+00> : vector<8x128xf32>
    %5 = tpu.matmul %3, %4, %cst {dimension_numbers = #tpu.dot_dimension_numbers<[1], [0], [0], [1], [0, 0, 1, 1], [], []>} : vector<8x128xf32>, vector<128x128xf32>, vector<8x128xf32> -> vector<8x128xf32>
    %c0_4 = arith.constant 0 : index
    %c0_5 = arith.constant 0 : index
    %6 = vector.load %arg4[%c0_4, %c0_5] : memref<1x128xf32, #tpu.memory_space<vmem>>, vector<1x128xf32>
    %7 = vector.broadcast %6 : vector<1x128xf32> to vector<8x128xf32>
    %8 = arith.addf %5, %7 : vector<8x128xf32>
    %cst_6 = arith.constant 0.000000e+00 : f32
    %9 = vector.broadcast %cst_6 : f32 to vector<8x128xf32>
    %10 = arith.maximumf %8, %9 : vector<8x128xf32>
    %c0_7 = arith.constant 0 : index
    %c0_8 = arith.constant 0 : index
    %11 = vector.load %arg8[%c0_7, %c0_8] : memref<8x128xf32, #tpu.memory_space<vmem>>, vector<8x128xf32>
    %c0_9 = arith.constant 0 : index
    %c0_10 = arith.constant 0 : index
    %12 = vector.load %arg5[%c0_9, %c0_10] : memref<128x128xf32, #tpu.memory_space<vmem>>, vector<128x128xf32>
    %cst_11 = arith.constant dense<0.000000e+00> : vector<8x128xf32>
    %13 = tpu.matmul %10, %12, %cst_11 {dimension_numbers = #tpu.dot_dimension_numbers<[1], [0], [0], [1], [0, 0, 1, 1], [], []>} : vector<8x128xf32>, vector<128x128xf32>, vector<8x128xf32> -> vector<8x128xf32>
    %14 = arith.addf %11, %13 : vector<8x128xf32>
    %c0_12 = arith.constant 0 : index
    %c0_13 = arith.constant 0 : index
    %15 = vector.load %arg8[%c0_12, %c0_13] : memref<8x128xf32, #tpu.memory_space<vmem>>, vector<8x128xf32>
    tpu.vector_store %arg8[%c0_12, %c0_13], %14 {strides = array<i32>} : memref<8x128xf32, #tpu.memory_space<vmem>>, vector<8x128xf32>,
    %c0_i32_14 = arith.constant 0 : i32
    %16 = arith.cmpi eq, %arg1, %c0_i32_14 : i32
    %17 = arith.extui %16 : i1 to i32
    %c0_i32_15 = arith.constant 0 : i32
    %18 = arith.cmpi ne, %17, %c0_i32_15 : i32
    scf.if %18 {
      %c0_16 = arith.constant 0 : index
      %c0_17 = arith.constant 0 : index
      %19 = vector.load %arg8[%c0_16, %c0_17] : memref<8x128xf32, #tpu.memory_space<vmem>>, vector<8x128xf32>
      %c0_18 = arith.constant 0 : index
      %c0_19 = arith.constant 0 : index
      %20 = vector.load %arg6[%c0_18, %c0_19] : memref<1x128xf32, #tpu.memory_space<vmem>>, vector<1x128xf32>
      %21 = vector.broadcast %20 : vector<1x128xf32> to vector<8x128xf32>
      %22 = arith.addf %19, %21 : vector<8x128xf32>
      %c0_20 = arith.constant 0 : index
      %c0_21 = arith.constant 0 : index
      %23 = vector.load %arg7[%c0_20, %c0_21] : memref<8x128xf32, #tpu.memory_space<vmem>>, vector<8x128xf32>
      tpu.vector_store %arg7[%c0_20, %c0_21], %22 {strides = array<i32>} : memref<8x128xf32, #tpu.memory_space<vmem>>, vector<8x128xf32>,
    } else {
    }
    return
  }
  func.func @transform_0(%arg0: i32, %arg1: i32) -> (i32, i32) {
    %c0_i32 = arith.constant 0 : i32
    %c0_i32_0 = arith.constant 0 : i32
    return %arg0, %c0_i32 : i32, i32
  }
  func.func @transform_1(%arg0: i32, %arg1: i32) -> (i32, i32) {
    %c0_i32 = arith.constant 0 : i32
    %c0_i32_0 = arith.constant 0 : i32
    return %c0_i32, %arg1 : i32, i32
  }
  func.func @transform_2(%arg0: i32, %arg1: i32) -> (i32, i32) {
    %c0_i32 = arith.constant 0 : i32
    %c0_i32_0 = arith.constant 0 : i32
    return %c0_i32, %arg1 : i32, i32
  }
  func.func @transform_3(%arg0: i32, %arg1: i32) -> (i32, i32) {
    %c0_i32 = arith.constant 0 : i32
    %c0_i32_0 = arith.constant 0 : i32
    return %arg1, %c0_i32 : i32, i32
  }
  func.func @transform_4(%arg0: i32, %arg1: i32) -> (i32, i32) {
    %c0_i32 = arith.constant 0 : i32
    %c0_i32_0 = arith.constant 0 : i32
    %c0_i32_1 = arith.constant 0 : i32
    return %c0_i32, %c0_i32_0 : i32, i32
  }
  func.func @transform_5(%arg0: i32, %arg1: i32) -> (i32, i32) {
    %c0_i32 = arith.constant 0 : i32
    %c0_i32_0 = arith.constant 0 : i32
    return %arg0, %c0_i32 : i32, i32
  }
}

module attributes {stable_mosaic.version = 11 : i64} {
  func.func @meta_sequential_kernel(%arg0: i32, %arg1: i32, %arg2: memref<8x128xf32, #tpu.memory_space<vmem>>, %arg3: memref<128x128xf32, #tpu.memory_space<vmem>>, %arg4: memref<1x128xf32, #tpu.memory_space<vmem>>, %arg5: memref<128x128xf32, #tpu.memory_space<vmem>>, %arg6: memref<1x128xf32, #tpu.memory_space<vmem>>, %arg7: memref<8x128xf32, #tpu.memory_space<vmem>>, %arg8: memref<8x128xf32, #tpu.memory_space<vmem>>) attributes {dimension_semantics = [#tpu.dimension_semantics<parallel>, #tpu.dimension_semantics<arbitrary>], iteration_bounds = array<i64: 1, 1>, scalar_prefetch = 0 : i64, scratch_operands = 1 : i64, tpu.core_type = #tpu.core_type<tc>, window_params = [{transform_indices = @transform_0, window_bounds = array<i64: 8, 128>}, {transform_indices = @transform_1, window_bounds = array<i64: 128, 128>}, {transform_indices = @transform_2, window_bounds = array<i64: 1, 128>}, {transform_indices = @transform_3, window_bounds = array<i64: 128, 128>}, {pipeline_mode = #tpu.pipeline_mode<synchronous>, transform_indices = @transform_4, window_bounds = array<i64: 1, 128>}, {transform_indices = @transform_5, window_bounds = array<i64: 8, 128>}]} {
    %c0_i32 = arith.constant 0 : i32
    %0 = arith.cmpi eq, %arg1, %c0_i32 : i32
    %1 = arith.extui %0 : i1 to i32
    %c0_i32_0 = arith.constant 0 : i32
    %2 = arith.cmpi ne, %1, %c0_i32_0 : i32
    scf.if %2 {
      %cst_16 = arith.constant 0.000000e+00 : f32
      %19 = vector.broadcast %cst_16 : f32 to vector<8x128xf32>
      %c0_17 = arith.constant 0 : index
      %c0_18 = arith.constant 0 : index
      %20 = vector.load %arg8[%c0_17, %c0_18] : memref<8x128xf32, #tpu.memory_space<vmem>>, vector<8x128xf32>
      tpu.vector_store %arg8[%c0_17, %c0_18], %19 {strides = array<i32>} : memref<8x128xf32, #tpu.memory_space<vmem>>, vector<8x128xf32>,
    } else {
    }
    %c0 = arith.constant 0 : index
    %c0_1 = arith.constant 0 : index
    %3 = vector.load %arg2[%c0, %c0_1] : memref<8x128xf32, #tpu.memory_space<vmem>>, vector<8x128xf32>
    %c0_2 = arith.constant 0 : index
    %c0_3 = arith.constant 0 : index
    %4 = vector.load %arg3[%c0_2, %c0_3] : memref<128x128xf32, #tpu.memory_space<vmem>>, vector<128x128xf32>
    %cst = arith.constant dense<0.000000e+00> : vector<8x128xf32>
    %5 = tpu.matmul %3, %4, %cst {dimension_numbers = #tpu.dot_dimension_numbers<[1], [0], [0], [1], [0, 0, 1, 1], [], []>} : vector<8x128xf32>, vector<128x128xf32>, vector<8x128xf32> -> vector<8x128xf32>
    %c0_4 = arith.constant 0 : index
    %c0_5 = arith.constant 0 : index
    %6 = vector.load %arg4[%c0_4, %c0_5] : memref<1x128xf32, #tpu.memory_space<vmem>>, vector<1x128xf32>
    %7 = vector.broadcast %6 : vector<1x128xf32> to vector<8x128xf32>
    %8 = arith.addf %5, %7 : vector<8x128xf32>
    %cst_6 = arith.constant 0.000000e+00 : f32
    %9 = vector.broadcast %cst_6 : f32 to vector<8x128xf32>
    %10 = arith.maximumf %8, %9 : vector<8x128xf32>
    %c0_7 = arith.constant 0 : index
    %c0_8 = arith.constant 0 : index
    %11 = vector.load %arg8[%c0_7, %c0_8] : memref<8x128xf32, #tpu.memory_space<vmem>>, vector<8x128xf32>
    %c0_9 = arith.constant 0 : index
    %c0_10 = arith.constant 0 : index
    %12 = vector.load %arg5[%c0_9, %c0_10] : memref<128x128xf32, #tpu.memory_space<vmem>>, vector<128x128xf32>
    %cst_11 = arith.constant dense<0.000000e+00> : vector<8x128xf32>
    %13 = tpu.matmul %10, %12, %cst_11 {dimension_numbers = #tpu.dot_dimension_numbers<[1], [0], [0], [1], [0, 0, 1, 1], [], []>} : vector<8x128xf32>, vector<128x128xf32>, vector<8x128xf32> -> vector<8x128xf32>
    %14 = arith.addf %11, %13 : vector<8x128xf32>
    %c0_12 = arith.constant 0 : index
    %c0_13 = arith.constant 0 : index
    %15 = vector.load %arg8[%c0_12, %c0_13] : memref<8x128xf32, #tpu.memory_space<vmem>>, vector<8x128xf32>
    tpu.vector_store %arg8[%c0_12, %c0_13], %14 {strides = array<i32>} : memref<8x128xf32, #tpu.memory_space<vmem>>, vector<8x128xf32>,
    %c0_i32_14 = arith.constant 0 : i32
    %16 = arith.cmpi eq, %arg1, %c0_i32_14 : i32
    %17 = arith.extui %16 : i1 to i32
    %c0_i32_15 = arith.constant 0 : i32
    %18 = arith.cmpi ne, %17, %c0_i32_15 : i32
    scf.if %18 {
      %c0_16 = arith.constant 0 : index
      %c0_17 = arith.constant 0 : index
      %19 = vector.load %arg8[%c0_16, %c0_17] : memref<8x128xf32, #tpu.memory_space<vmem>>, vector<8x128xf32>
      %c0_18 = arith.constant 0 : index
      %c0_19 = arith.constant 0 : index
      %20 = vector.load %arg6[%c0_18, %c0_19] : memref<1x128xf32, #tpu.memory_space<vmem>>, vector<1x128xf32>
      %21 = vector.broadcast %20 : vector<1x128xf32> to vector<8x128xf32>
      %22 = arith.addf %19, %21 : vector<8x128xf32>
      %c0_20 = arith.constant 0 : index
      %c0_21 = arith.constant 0 : index
      %23 = vector.load %arg7[%c0_20, %c0_21] : memref<8x128xf32, #tpu.memory_space<vmem>>, vector<8x128xf32>
      tpu.vector_store %arg7[%c0_20, %c0_21], %22 {strides = array<i32>} : memref<8x128xf32, #tpu.memory_space<vmem>>, vector<8x128xf32>,
    } else {
    }
    return
  }
  func.func @transform_0(%arg0: i32, %arg1: i32) -> (i32, i32) {
    %c0_i32 = arith.constant 0 : i32
    %c0_i32_0 = arith.constant 0 : i32
    return %arg0, %c0_i32 : i32, i32
  }
  func.func @transform_1(%arg0: i32, %arg1: i32) -> (i32, i32) {
    %c0_i32 = arith.constant 0 : i32
    %c0_i32_0 = arith.constant 0 : i32
    return %c0_i32, %arg1 : i32, i32
  }
  func.func @transform_2(%arg0: i32, %arg1: i32) -> (i32, i32) {
    %c0_i32 = arith.constant 0 : i32
    %c0_i32_0 = arith.constant 0 : i32
    return %c0_i32, %arg1 : i32, i32
  }
  func.func @transform_3(%arg0: i32, %arg1: i32) -> (i32, i32) {
    %c0_i32 = arith.constant 0 : i32
    %c0_i32_0 = arith.constant 0 : i32
    return %arg1, %c0_i32 : i32, i32
  }
  func.func @transform_4(%arg0: i32, %arg1: i32) -> (i32, i32) {
    %c0_i32 = arith.constant 0 : i32
    %c0_i32_0 = arith.constant 0 : i32
    %c0_i32_1 = arith.constant 0 : i32
    return %c0_i32, %c0_i32_0 : i32, i32
  }
  func.func @transform_5(%arg0: i32, %arg1: i32) -> (i32, i32) {
    %c0_i32 = arith.constant 0 : i32
    %c0_i32_0 = arith.constant 0 : i32
    return %arg0, %c0_i32 : i32, i32
  }
}

</mosaic_0001>

<bundles_post_ra>
// kernel: tpu_custom_call.1
= control target key start
LH: loop header
LB: loop body
LE: loop exit
PB: predicated region body
PF: predicated region fallthrough
CT: control target
= control target key end

     0   :  { %10 = vsyncpa [#allocation4], 0  ;;  %s344_s0 = inlined_call_operand.hbm [shape: f32[8,128], index: 0, kind: input, shape index: {}]   ;;  %s345_s1 = inlined_call_operand.hbm [shape: f32[128,128], index: 1, kind: input, shape index: {}]   ;;  %s346_s2 = inlined_call_operand.vmem [shape: f32[1,128], index: 2, kind: input, shape index: {}]   ;;  %s347_s3 = inlined_call_operand.hbm [shape: f32[128,128], index: 3, kind: input, shape index: {}]   ;;  %s348_s4 = inlined_call_operand.vmem [shape: f32[1,128], index: 4, kind: input, shape index: {}]   ;;  %s349_s5 = inlined_call_operand.hbm [shape: f32[8,128], index: 5, kind: output, shape index: {}]  }
   0x1   :  { %11 = vsyncpa [#allocation7], 0  ;;  %s28_s20 = sshll.u32 %s345_s1, 4  ;;  %s29_s20 = int_to_ptr.hbm [resolvable:$true] %s28_s20 }
   0x2   :  { %12 = vsyncpa [#allocation5], 0  ;;  %s290_s21 = smov [#allocation6]   ;;  %s18_s25 = sshll.u32 %s344_s0, 4  ;;  %s19_s25 = int_to_ptr.hbm [resolvable:$true] %s18_s25 }
   0x3   :  { %s30_s22 = sshll.u32 %s290_s21, 4  ;;  %s291_s26 = smov 128   ;;  %s31_s22 = int_to_ptr.vmem [resolvable:$true] %s30_s22 }
   0x4   :  { %s292_s27 = smov 8   ;;  %s293_s28 = smov [#allocation3]  }
   0x5   :  { %36 = dma.hbm_to_vmem [thread:$0]  %s29_s20, 2048, %s31_s22, [#allocation7], %s291_s26, %s291_s26, %s292_s27  }
   0x6   :  { %s20_s29 = sshll.u32 %s293_s28, 4  ;;  %s43_s7 = sshll.u32 %s347_s3, 4  ;;  %s21_s29 = int_to_ptr.vmem [resolvable:$true] %s20_s29  ;;  %s44_s7 = int_to_ptr.hbm [resolvable:$true] %s43_s7 }
   0x7   :  { %23 = dma.hbm_to_vmem [thread:$0]  %s19_s25, 128, %s21_s29, [#allocation4]  }
   0x8   :  { %s294_s1 = smov [#allocation8]  }
   0x9   :  { %s45_s8 = sshll.u32 %s294_s1, 4  ;;  %s46_s8 = int_to_ptr.vmem [resolvable:$true] %s45_s8 }
   0xa   :  { %51 = dma.hbm_to_vmem [thread:$0]  %s44_s7, 2048, %s46_s8, [#allocation7], %s291_s26, %s291_s26, %s292_s27  }
   0xb   :  { %284 = dma.done.wait [#allocation4], 128  }
   0xc   :  { %285 = vsyncadd [#allocation4], 4294967168 }
   0xd   :  { %286 = dma.done.wait [#allocation7], 4096  }
   0xe   :  { %287 = vsyncadd [#allocation7], 4294963200  ;;  %v87_v0 = vld [vmem:[#allocation6 + $0x78] sm:$0xff]  ;;  %v86_v1 = vld [vmem:[#allocation6 + $0x70] sm:$0xff]  ;;  %s295_s11 = smov [#allocation9]   ;;  %s169_s15 = sshll.u32 %s349_s5, 4  ;;  %s170_s15 = int_to_ptr.hbm [resolvable:$true] %s169_s15 }
   0xf   :  { %92 = vmatpush.msra.mxu0 %v87_v0  ;;  %v85_v2 = vld [vmem:[#allocation6 + $0x68] sm:$0xff]  ;;  %v84_v3 = vld [vmem:[#allocation6 + $0x60] sm:$0xff]  ;;  %v129_v4 = vld [vmem:[#allocation8 + $0x78] sm:$0xff]  ;;  %s167_s12 = sshll.u32 %s295_s11, 4  ;;  %s168_s12 = int_to_ptr.vmem [resolvable:$true] %s167_s12 }
  0x10   :  { %v83_v5 = vld [vmem:[#allocation6 + $0x58] sm:$0xff]  ;;  %130 = vmatpush.msra.mxu1 %v129_v4  ;;  %v128_v6 = vld [vmem:[#allocation8 + $0x70] sm:$0xff]  ;;  %v127_v7 = vld [vmem:[#allocation8 + $0x68] sm:$0xff] }
  0x11   :  { %93 = vmatpush.msra.mxu0 %v86_v1  ;;  %v82_v8 = vld [vmem:[#allocation6 + $0x50] sm:$0xff]  ;;  %v126_v9 = vld [vmem:[#allocation8 + $0x60] sm:$0xff]  ;;  %v81_v10 = vld [vmem:[#allocation6 + $0x48] sm:$0xff] }
  0x12   :  { %131 = vmatpush.msra.mxu1 %v128_v6  ;;  %v125_v11 = vld [vmem:[#allocation8 + $0x58] sm:$0xff]  ;;  %v80_v12 = vld [vmem:[#allocation6 + $0x40] sm:$0xff]  ;;  %v124_v13 = vld [vmem:[#allocation8 + $0x50] sm:$0xff] }
  0x13   :  { %94 = vmatpush.msra.mxu0 %v85_v2  ;;  %v79_v14 = vld [vmem:[#allocation6 + $0x38] sm:$0xff]  ;;  %v123_v15 = vld [vmem:[#allocation8 + $0x48] sm:$0xff]  ;;  %v78_v16 = vld [vmem:[#allocation6 + $0x30] sm:$0xff] }
  0x14   :  { %132 = vmatpush.msra.mxu1 %v127_v7  ;;  %v122_v17 = vld [vmem:[#allocation8 + $0x40] sm:$0xff]  ;;  %v77_v18 = vld [vmem:[#allocation6 + $0x28] sm:$0xff]  ;;  %v121_v19 = vld [vmem:[#allocation8 + $0x38] sm:$0xff] }
  0x15   :  { %95 = vmatpush.msra.mxu0 %v84_v3  ;;  %v76_v20 = vld [vmem:[#allocation6 + $0x20] sm:$0xff]  ;;  %v120_v21 = vld [vmem:[#allocation8 + $0x30] sm:$0xff]  ;;  %v75_v22 = vld [vmem:[#allocation6 + $0x18] sm:$0xff] }
  0x16   :  { %133 = vmatpush.msra.mxu1 %v126_v9  ;;  %v119_v23 = vld [vmem:[#allocation8 + $0x28] sm:$0xff]  ;;  %v74_v24 = vld [vmem:[#allocation6 + $0x10] sm:$0xff]  ;;  %v118_v25 = vld [vmem:[#allocation8 + $0x20] sm:$0xff] }
  0x17   :  { %96 = vmatpush.msra.mxu0 %v83_v5  ;;  %v73_v26 = vld [vmem:[#allocation6 + $0x8] sm:$0xff]  ;;  %v117_v27 = vld [vmem:[#allocation8 + $0x18] sm:$0xff]  ;;  %v72_v28 = vld [vmem:[#allocation6] sm:$0xff] }
  0x18   :  { %134 = vmatpush.msra.mxu1 %v125_v11  ;;  %v71_v29 = vld [vmem:[#allocation3] sm:$0xff]  ;;  %v116_v30 = vld [vmem:[#allocation8 + $0x10] sm:$0xff]  ;;  %v115_v31 = vld [vmem:[#allocation8 + $0x8] sm:$0xff] }
  0x19   :  { %97 = vmatpush.msra.mxu0 %v82_v8  ;;  %v114_v32 = vld [vmem:[#allocation8] sm:$0xff]  ;;  %v186_v33 = vld [vmem:[%s346_s2] ss:$0 sm:$0xff] }
  0x1a   :  { %135 = vmatpush.msra.mxu1 %v124_v13  ;;  %v187_v37 = vld [vmem:[%s348_s4] ss:$0 sm:$0xff] }
  0x1b   :  { %98 = vmatpush.msra.mxu0 %v81_v10 }
  0x1c   :  { %136 = vmatpush.msra.mxu1 %v123_v15 }
  0x1d   :  { %99 = vmatpush.msra.mxu0 %v80_v12 }
  0x1e   :  { %137 = vmatpush.msra.mxu1 %v122_v17 }
  0x1f   :  { %100 = vmatpush.msra.mxu0 %v79_v14 }
  0x20   :  { %138 = vmatpush.msra.mxu1 %v121_v19 }
  0x21   :  { %101 = vmatpush.msra.mxu0 %v78_v16 }
  0x22   :  { %139 = vmatpush.msra.mxu1 %v120_v21 }
  0x23   :  { %102 = vmatpush.msra.mxu0 %v77_v18 }
  0x24   :  { %140 = vmatpush.msra.mxu1 %v119_v23 }
  0x25   :  { %103 = vmatpush.msra.mxu0 %v76_v20 }
  0x26   :  { %141 = vmatpush.msra.mxu1 %v118_v25 }
  0x27   :  { %104 = vmatpush.msra.mxu0 %v75_v22 }
  0x28   :  { %142 = vmatpush.msra.mxu1 %v117_v27 }
  0x29   :  { %105 = vmatpush.msra.mxu0 %v74_v24 }
  0x2a   :  { %143 = vmatpush.msra.mxu1 %v116_v30 }
  0x2b   :  { %106 = vmatpush.msra.mxu0 %v73_v26 }
  0x2c   :  { %144 = vmatpush.msra.mxu1 %v115_v31 }
  0x2d   :  { %107 = vmatpush.msra.mxu0 %v72_v28 }
  0x2e   :  { %108 = vmatmul.f32.vlgmr.msra.gmra.mxu0 %v71_v29  ;;  %145 = vmatpush.msra.mxu1 %v114_v32 }
  0xab   :  { %v109_v34 = vpop.f32.mrf.mxu0 }
  0xac   :  { %v110_v35 = vadd.f32 %v186_v33, %v109_v34 }
  0xae   :  { %v112_v36 = vmax.f32 %v110_v35, 0.0 }
  0xb0   :  { %146 = vmatmul.f32.vlgmr.msra.gmra.mxu1 %v112_v36 }
 0x12d   :  { %v147_v38 = vpop.f32.mrf.mxu1 }
 0x12e   :  { %v160_v39 = vadd.f32 %v187_v37, %v147_v38 }
 0x130   :  { %161 = vst [vmem:[#allocation9] sm:$0xff] %v160_v39 }
 0x131   :  { %172 = dma.vmem_to_hbm [thread:$0]  %s168_s12, 128, %s170_s15, [#allocation5]  }
 0x132   :  { %288 = dma.done.wait [#allocation5], 128  }
 0x133   :  { %289 = vsyncadd [#allocation5], 4294967168 }
 0x134   :  { %177 = vsyncpa [#allocation4], 1 }
 0x135   :  { %178 = vsyncpa [#allocation7], 1 }
 0x136   :  { %179 = vsyncpa [#allocation5], 1 }

// kernel: tpu_custom_call.1
= control target key start
LH: loop header
LB: loop body
LE: loop exit
PB: predicated region body
PF: predicated region fallthrough
CT: control target
= control target key end

     0   :  { %10 = vsyncpa [#allocation4], 0  ;;  %s344_s0 = inlined_call_operand.hbm [shape: f32[8,128], index: 0, kind: input, shape index: {}]   ;;  %s345_s1 = inlined_call_operand.hbm [shape: f32[128,128], index: 1, kind: input, shape index: {}]   ;;  %s346_s2 = inlined_call_operand.vmem [shape: f32[1,128], index: 2, kind: input, shape index: {}]   ;;  %s347_s3 = inlined_call_operand.hbm [shape: f32[128,128], index: 3, kind: input, shape index: {}]   ;;  %s348_s4 = inlined_call_operand.vmem [shape: f32[1,128], index: 4, kind: input, shape index: {}]   ;;  %s349_s5 = inlined_call_operand.hbm [shape: f32[8,128], index: 5, kind: output, shape index: {}]  }
   0x1   :  { %11 = vsyncpa [#allocation7], 0  ;;  %s28_s20 = sshll.u32 %s345_s1, 4  ;;  %s29_s20 = int_to_ptr.hbm [resolvable:$true] %s28_s20 }
   0x2   :  { %12 = vsyncpa [#allocation5], 0  ;;  %s290_s21 = smov [#allocation6]   ;;  %s18_s25 = sshll.u32 %s344_s0, 4  ;;  %s19_s25 = int_to_ptr.hbm [resolvable:$true] %s18_s25 }
   0x3   :  { %s30_s22 = sshll.u32 %s290_s21, 4  ;;  %s291_s26 = smov 128   ;;  %s31_s22 = int_to_ptr.vmem [resolvable:$true] %s30_s22 }
   0x4   :  { %s292_s27 = smov 8   ;;  %s293_s28 = smov [#allocation3]  }
   0x5   :  { %36 = dma.hbm_to_vmem [thread:$0]  %s29_s20, 2048, %s31_s22, [#allocation7], %s291_s26, %s291_s26, %s292_s27  }
   0x6   :  { %s20_s29 = sshll.u32 %s293_s28, 4  ;;  %s43_s7 = sshll.u32 %s347_s3, 4  ;;  %s21_s29 = int_to_ptr.vmem [resolvable:$true] %s20_s29  ;;  %s44_s7 = int_to_ptr.hbm [resolvable:$true] %s43_s7 }
   0x7   :  { %23 = dma.hbm_to_vmem [thread:$0]  %s19_s25, 128, %s21_s29, [#allocation4]  }
   0x8   :  { %s294_s1 = smov [#allocation8]  }
   0x9   :  { %s45_s8 = sshll.u32 %s294_s1, 4  ;;  %s46_s8 = int_to_ptr.vmem [resolvable:$true] %s45_s8 }
   0xa   :  { %51 = dma.hbm_to_vmem [thread:$0]  %s44_s7, 2048, %s46_s8, [#allocation7], %s291_s26, %s291_s26, %s292_s27  }
   0xb   :  { %284 = dma.done.wait [#allocation4], 128  }
   0xc   :  { %285 = vsyncadd [#allocation4], 4294967168 }
   0xd   :  { %286 = dma.done.wait [#allocation7], 4096  }
   0xe   :  { %287 = vsyncadd [#allocation7], 4294963200  ;;  %v87_v0 = vld [vmem:[#allocation6 + $0x78] sm:$0xff]  ;;  %v86_v1 = vld [vmem:[#allocation6 + $0x70] sm:$0xff]  ;;  %s295_s11 = smov [#allocation9]   ;;  %s169_s15 = sshll.u32 %s349_s5, 4  ;;  %s170_s15 = int_to_ptr.hbm [resolvable:$true] %s169_s15 }
   0xf   :  { %92 = vmatpush.msra.mxu0 %v87_v0  ;;  %v85_v2 = vld [vmem:[#allocation6 + $0x68] sm:$0xff]  ;;  %v84_v3 = vld [vmem:[#allocation6 + $0x60] sm:$0xff]  ;;  %v129_v4 = vld [vmem:[#allocation8 + $0x78] sm:$0xff]  ;;  %s167_s12 = sshll.u32 %s295_s11, 4  ;;  %s168_s12 = int_to_ptr.vmem [resolvable:$true] %s167_s12 }
  0x10   :  { %v83_v5 = vld [vmem:[#allocation6 + $0x58] sm:$0xff]  ;;  %130 = vmatpush.msra.mxu1 %v129_v4  ;;  %v128_v6 = vld [vmem:[#allocation8 + $0x70] sm:$0xff]  ;;  %v127_v7 = vld [vmem:[#allocation8 + $0x68] sm:$0xff] }
  0x11   :  { %93 = vmatpush.msra.mxu0 %v86_v1  ;;  %v82_v8 = vld [vmem:[#allocation6 + $0x50] sm:$0xff]  ;;  %v126_v9 = vld [vmem:[#allocation8 + $0x60] sm:$0xff]  ;;  %v81_v10 = vld [vmem:[#allocation6 + $0x48] sm:$0xff] }
  0x12   :  { %131 = vmatpush.msra.mxu1 %v128_v6  ;;  %v125_v11 = vld [vmem:[#allocation8 + $0x58] sm:$0xff]  ;;  %v80_v12 = vld [vmem:[#allocation6 + $0x40] sm:$0xff]  ;;  %v124_v13 = vld [vmem:[#allocation8 + $0x50] sm:$0xff] }
  0x13   :  { %94 = vmatpush.msra.mxu0 %v85_v2  ;;  %v79_v14 = vld [vmem:[#allocation6 + $0x38] sm:$0xff]  ;;  %v123_v15 = vld [vmem:[#allocation8 + $0x48] sm:$0xff]  ;;  %v78_v16 = vld [vmem:[#allocation6 + $0x30] sm:$0xff] }
  0x14   :  { %132 = vmatpush.msra.mxu1 %v127_v7  ;;  %v122_v17 = vld [vmem:[#allocation8 + $0x40] sm:$0xff]  ;;  %v77_v18 = vld [vmem:[#allocation6 + $0x28] sm:$0xff]  ;;  %v121_v19 = vld [vmem:[#allocation8 + $0x38] sm:$0xff] }
  0x15   :  { %95 = vmatpush.msra.mxu0 %v84_v3  ;;  %v76_v20 = vld [vmem:[#allocation6 + $0x20] sm:$0xff]  ;;  %v120_v21 = vld [vmem:[#allocation8 + $0x30] sm:$0xff]  ;;  %v75_v22 = vld [vmem:[#allocation6 + $0x18] sm:$0xff] }
  0x16   :  { %133 = vmatpush.msra.mxu1 %v126_v9  ;;  %v119_v23 = vld [vmem:[#allocation8 + $0x28] sm:$0xff]  ;;  %v74_v24 = vld [vmem:[#allocation6 + $0x10] sm:$0xff]  ;;  %v118_v25 = vld [vmem:[#allocation8 + $0x20] sm:$0xff] }
  0x17   :  { %96 = vmatpush.msra.mxu0 %v83_v5  ;;  %v73_v26 = vld [vmem:[#allocation6 + $0x8] sm:$0xff]  ;;  %v117_v27 = vld [vmem:[#allocation8 + $0x18] sm:$0xff]  ;;  %v72_v28 = vld [vmem:[#allocation6] sm:$0xff] }
  0x18   :  { %134 = vmatpush.msra.mxu1 %v125_v11  ;;  %v71_v29 = vld [vmem:[#allocation3] sm:$0xff]  ;;  %v116_v30 = vld [vmem:[#allocation8 + $0x10] sm:$0xff]  ;;  %v115_v31 = vld [vmem:[#allocation8 + $0x8] sm:$0xff] }
  0x19   :  { %97 = vmatpush.msra.mxu0 %v82_v8  ;;  %v114_v32 = vld [vmem:[#allocation8] sm:$0xff]  ;;  %v186_v33 = vld [vmem:[%s346_s2] ss:$0 sm:$0xff] }
  0x1a   :  { %135 = vmatpush.msra.mxu1 %v124_v13  ;;  %v187_v37 = vld [vmem:[%s348_s4] ss:$0 sm:$0xff] }
  0x1b   :  { %98 = vmatpush.msra.mxu0 %v81_v10 }
  0x1c   :  { %136 = vmatpush.msra.mxu1 %v123_v15 }
  0x1d   :  { %99 = vmatpush.msra.mxu0 %v80_v12 }
  0x1e   :  { %137 = vmatpush.msra.mxu1 %v122_v17 }
  0x1f   :  { %100 = vmatpush.msra.mxu0 %v79_v14 }
  0x20   :  { %138 = vmatpush.msra.mxu1 %v121_v19 }
  0x21   :  { %101 = vmatpush.msra.mxu0 %v78_v16 }
  0x22   :  { %139 = vmatpush.msra.mxu1 %v120_v21 }
  0x23   :  { %102 = vmatpush.msra.mxu0 %v77_v18 }
  0x24   :  { %140 = vmatpush.msra.mxu1 %v119_v23 }
  0x25   :  { %103 = vmatpush.msra.mxu0 %v76_v20 }
  0x26   :  { %141 = vmatpush.msra.mxu1 %v118_v25 }
  0x27   :  { %104 = vmatpush.msra.mxu0 %v75_v22 }
  0x28   :  { %142 = vmatpush.msra.mxu1 %v117_v27 }
  0x29   :  { %105 = vmatpush.msra.mxu0 %v74_v24 }
  0x2a   :  { %143 = vmatpush.msra.mxu1 %v116_v30 }
  0x2b   :  { %106 = vmatpush.msra.mxu0 %v73_v26 }
  0x2c   :  { %144 = vmatpush.msra.mxu1 %v115_v31 }
  0x2d   :  { %107 = vmatpush.msra.mxu0 %v72_v28 }
  0x2e   :  { %108 = vmatmul.f32.vlgmr.msra.gmra.mxu0 %v71_v29  ;;  %145 = vmatpush.msra.mxu1 %v114_v32 }
  0xab   :  { %v109_v34 = vpop.f32.mrf.mxu0 }
  0xac   :  { %v110_v35 = vadd.f32 %v186_v33, %v109_v34 }
  0xae   :  { %v112_v36 = vmax.f32 %v110_v35, 0.0 }
  0xb0   :  { %146 = vmatmul.f32.vlgmr.msra.gmra.mxu1 %v112_v36 }
 0x12d   :  { %v147_v38 = vpop.f32.mrf.mxu1 }
 0x12e   :  { %v160_v39 = vadd.f32 %v187_v37, %v147_v38 }
 0x130   :  { %161 = vst [vmem:[#allocation9] sm:$0xff] %v160_v39 }
 0x131   :  { %172 = dma.vmem_to_hbm [thread:$0]  %s168_s12, 128, %s170_s15, [#allocation5]  }
 0x132   :  { %288 = dma.done.wait [#allocation5], 128  }
 0x133   :  { %289 = vsyncadd [#allocation5], 4294967168 }
 0x134   :  { %177 = vsyncpa [#allocation4], 1 }
 0x135   :  { %178 = vsyncpa [#allocation7], 1 }
 0x136   :  { %179 = vsyncpa [#allocation5], 1 }

</bundles_post_ra>
